<compile_context>
chip_gen: v6e
topology: v6e:2x2x1
jax: 0.10.0
libtpu: 0.0.40
codegen_flags: <defaults>
</compile_context>

<pallas_src>
import numpy as np
import jax
import jax.numpy as jnp
from jax.experimental import pallas as pl
from jax.experimental.pallas import tpu as pltpu


# ----------------------------------------------------------------------------
# Pallas kernel: fused 1x1 conv (channel matmul) + bias + tanh for one
# (batch element, spatial tile).
# ----------------------------------------------------------------------------
def outconv_kernel(x_ref, w_ref, b_ref, o_ref):
    # x_ref : (Cin, T)     spatial tile of one batch element (T multiple of 128)
    # w_ref : (Cout, Cin)  1x1 conv weights
    # b_ref : (Cout, 1)    conv bias
    # o_ref : (Cout, T)
    y = jnp.dot(w_ref[...], x_ref[...], preferred_element_type=jnp.float32)
    y = y + b_ref[...].astype(jnp.float32)
    o_ref[...] = jnp.tanh(y).astype(o_ref.dtype)


def outconv_forward(x_nchw, weight, bias, *, max_tile=32768):
    """tanh(Conv2d(kernel_size=1)(x)) on an NCHW input.

    x_nchw: (N, Cin, H, W)
    weight: (Cout, Cin, 1, 1) (raw PyTorch Conv2d param) or (Cout, Cin)
    bias:   (Cout,)
    Returns (N, Cout, H, W) in x's dtype (accumulation in f32).
    """
    N, Cin, H, W = x_nchw.shape
    Cout = weight.shape[0]
    HW = H * W

    w2 = weight.reshape(Cout, Cin)   # squeeze the 1x1 kernel dims if present
    b2 = bias.reshape(Cout, 1)

    # Free reshape of contiguous trailing dims; no pad, no copy.
    x2 = x_nchw.reshape(N, Cin, HW)

    # Lane-dense spatial tile: multiple of 128, capped at max_tile and at
    # HW rounded up to 128.  A partial last block is masked by Pallas.
    max_tile = max(128, (max_tile // 128) * 128)
    tile = min(max_tile, pl.cdiv(HW, 128) * 128)
    # Ensure at least 2 parallel grid steps when possible (v7x: 2 TensorCores;
    # neutral on v5e/v6e).
    if N * pl.cdiv(HW, tile) < 2 and tile > 128:
        tile = pl.cdiv(pl.cdiv(HW, 2), 128) * 128
    grid = (N, pl.cdiv(HW, tile))

    itemsize = jnp.dtype(x_nchw.dtype).itemsize
    cost = pl.CostEstimate(
        flops=2 * N * Cout * Cin * HW,
        transcendentals=N * Cout * HW,
        bytes_accessed=itemsize * (N * Cin * HW + N * Cout * HW)
        + jnp.dtype(weight.dtype).itemsize * Cout * Cin
        + jnp.dtype(bias.dtype).itemsize * Cout,
    )

    grid_spec = pltpu.PrefetchScalarGridSpec(
        num_scalar_prefetch=0,
        grid=grid,
        in_specs=[
            # Batch dim is squeezed out of the kernel view.
            pl.BlockSpec((pl.Squeezed(), Cin, tile), lambda n, t: (n, 0, t)),
            # Weights/bias: constant index map -> stay resident across steps.
            pl.BlockSpec((Cout, Cin), lambda n, t: (0, 0)),
            pl.BlockSpec((Cout, 1), lambda n, t: (0, 0)),
        ],
        out_specs=pl.BlockSpec((pl.Squeezed(), Cout, tile),
                               lambda n, t: (n, 0, t)),
    )

    out = pl.pallas_call(
        outconv_kernel,
        out_shape=jax.ShapeDtypeStruct((N, Cout, HW), x_nchw.dtype),
        grid_spec=grid_spec,
        compiler_params=pltpu.CompilerParams(
            dimension_semantics=("parallel", "parallel")),
        cost_estimate=cost,
    )(x2, w2, b2)

    return out.reshape(N, Cout, H, W)


# ----------------------------------------------------------------------------
if __name__ == "__main__":
    # OutConv(in_channels=4, out_channels=3) on a (2, 4, 16, 16) input.
    N, Cin, H, W = 2, 4, 16, 16
    Cout = 3

    key = jax.random.PRNGKey(0)
    k = jax.random.split(key, 3)
    x = jax.random.normal(k[0], (N, Cin, H, W), jnp.float32)
    # Raw PyTorch Conv2d weight shape (Cout, Cin, 1, 1); wrapper squeezes it.
    weight = 0.5 * jax.random.normal(k[1], (Cout, Cin, 1, 1), jnp.float32)
    bias = 0.1 * jax.random.normal(k[2], (Cout,), jnp.float32)

    out = outconv_forward(x, weight, bias)
    out = jax.block_until_ready(out)
    assert out.shape == (N, Cout, H, W), out.shape

    # Pure-JAX reference: tanh(1x1 conv + bias).
    ref = jnp.tanh(jnp.einsum('oc,nchw->nohw', weight.reshape(Cout, Cin), x)
                   + bias[None, :, None, None])
    np.testing.assert_allclose(np.asarray(out), np.asarray(ref),
                               rtol=1e-3, atol=1e-3)

    print("KERNEL_OK")
</pallas_src>

<mosaic_0001>
module attributes {stable_mosaic.version = 11 : i64} {
  func.func @outconv_kernel(%arg0: i32, %arg1: i32, %arg2: memref<1x4x256xf32, #tpu.memory_space<vmem>>, %arg3: memref<3x4xf32, #tpu.memory_space<vmem>>, %arg4: memref<3x1xf32, #tpu.memory_space<vmem>>, %arg5: memref<1x3x256xf32, #tpu.memory_space<vmem>>) attributes {dimension_semantics = [#tpu.dimension_semantics<parallel>, #tpu.dimension_semantics<parallel>], iteration_bounds = array<i64: 2, 1>, scalar_prefetch = 0 : i64, scratch_operands = 0 : i64, tpu.core_type = #tpu.core_type<tc>, window_params = [{transform_indices = @transform_0, window_bounds = array<i64: 1, 4, 256>}, {pipeline_mode = #tpu.pipeline_mode<synchronous>, transform_indices = @transform_1, window_bounds = array<i64: 3, 4>}, {pipeline_mode = #tpu.pipeline_mode<synchronous>, transform_indices = @transform_2, window_bounds = array<i64: 3, 1>}, {transform_indices = @transform_3, window_bounds = array<i64: 1, 3, 256>}]} {
    %c0 = arith.constant 0 : index
    %c0_0 = arith.constant 0 : index
    %0 = vector.load %arg3[%c0, %c0_0] : memref<3x4xf32, #tpu.memory_space<vmem>>, vector<3x4xf32>
    %c0_1 = arith.constant 0 : index
    %c0_2 = arith.constant 0 : index
    %c0_3 = arith.constant 0 : index
    %1 = vector.load %arg2[%c0_1, %c0_2, %c0_3] : memref<1x4x256xf32, #tpu.memory_space<vmem>>, vector<1x4x256xf32>
    %2 = vector.shape_cast %1 : vector<1x4x256xf32> to vector<4x256xf32>
    %cst = arith.constant dense<0.000000e+00> : vector<3x256xf32>
    %3 = tpu.matmul %0, %2, %cst {dimension_numbers = #tpu.dot_dimension_numbers<[1], [0], [0], [1], [0, 0, 1, 1], [], []>} : vector<3x4xf32>, vector<4x256xf32>, vector<3x256xf32> -> vector<3x256xf32>
    %c0_4 = arith.constant 0 : index
    %c0_5 = arith.constant 0 : index
    %4 = vector.load %arg4[%c0_4, %c0_5] : memref<3x1xf32, #tpu.memory_space<vmem>>, vector<3x1xf32>
    %5 = vector.broadcast %4 : vector<3x1xf32> to vector<3x256xf32>
    %6 = arith.addf %3, %5 : vector<3x256xf32>
    %7 = math.tanh %6 : vector<3x256xf32>
    %c0_6 = arith.constant 0 : index
    %c0_7 = arith.constant 0 : index
    %c0_8 = arith.constant 0 : index
    %8 = vector.load %arg5[%c0_6, %c0_7, %c0_8] : memref<1x3x256xf32, #tpu.memory_space<vmem>>, vector<1x3x256xf32>
    %9 = vector.shape_cast %8 : vector<1x3x256xf32> to vector<3x256xf32>
    %10 = vector.shape_cast %7 : vector<3x256xf32> to vector<1x3x256xf32>
    tpu.vector_store %arg5[%c0_6, %c0_7, %c0_8], %10 {strides = array<i32>} : memref<1x3x256xf32, #tpu.memory_space<vmem>>, vector<1x3x256xf32>,
    return
  }
  func.func @transform_0(%arg0: i32, %arg1: i32) -> (i32, i32, i32) {
    %c0_i32 = arith.constant 0 : i32
    %c0_i32_0 = arith.constant 0 : i32
    return %arg0, %c0_i32, %arg1 : i32, i32, i32
  }
  func.func @transform_1(%arg0: i32, %arg1: i32) -> (i32, i32) {
    %c0_i32 = arith.constant 0 : i32
    %c0_i32_0 = arith.constant 0 : i32
    %c0_i32_1 = arith.constant 0 : i32
    return %c0_i32, %c0_i32_0 : i32, i32
  }
  func.func @transform_2(%arg0: i32, %arg1: i32) -> (i32, i32) {
    %c0_i32 = arith.constant 0 : i32
    %c0_i32_0 = arith.constant 0 : i32
    %c0_i32_1 = arith.constant 0 : i32
    return %c0_i32, %c0_i32_0 : i32, i32
  }
  func.func @transform_3(%arg0: i32, %arg1: i32) -> (i32, i32, i32) {
    %c0_i32 = arith.constant 0 : i32
    %c0_i32_0 = arith.constant 0 : i32
    return %arg0, %c0_i32, %arg1 : i32, i32, i32
  }
}

</mosaic_0001>

<bundles_post_ra>
// kernel: tpu_custom_call.1
= control target key start
LH: loop header
LB: loop body
LE: loop exit
PB: predicated region body
PF: predicated region fallthrough
CT: control target
= control target key end

     0   :  { %8 = vsyncpa [#allocation3], 0  ;;  %s699_s0 = inlined_call_operand.hbm [shape: f32[2,4,256], index: 0, kind: input, shape index: {}]   ;;  %s700_s1 = inlined_call_operand.vmem [shape: f32[3,4], index: 1, kind: input, shape index: {}]   ;;  %s701_s2 = inlined_call_operand.vmem [shape: f32[3,1], index: 2, kind: input, shape index: {}]   ;;  %s702_s3 = inlined_call_operand.vmem [shape: f32[2,3,256], index: 3, kind: output, shape index: {}]  }
   0x1   :  { %10 = vsyncpa [#allocation3 + $0x1], 0  ;;  %s593_s12 = smov 0   ;;  %s595_s13 = smov 0  }
   0x2   :  { %s597_s14 = smov 0   ;;  %s599_s15 = smov 0  }
   0x3   :  { %s601_s16 = smov 0   ;;  %s603_s17 = smov 0  }
   0x4 LB: > { %s409_s18 = sadd.s32 4294967295, %s568_s17   ;;  %s28_s19 = sadd.s32 1, %s564_s16  ;;  %s568_s17 = sphi %s603_s17, %s16_s17   ;;  %s564_s16 = sphi %s601_s16, %s710_s16   ;;  %s560_s15 = sphi %s599_s15, %s709_s15   ;;  %s556_s14 = sphi %s597_s14, %s708_s14   ;;  %s552_s13 = sphi %s595_s13, %s707_s13   ;;  %s548_s12 = sphi %s593_s12, %s706_s12  }
   0x5   : > { %p30_p0 = scmp.ge.s32.totalorder %s28_s19, 2  ;;  %s37_s20 = sadd.s32 1, %s556_s14 }
   0x6   : > { %p44_p1 = scmp.ne.s32.totalorder %s556_s14, %s552_s13  ;;  %p45_p2 = scmp.eq.s32.totalorder %s568_s17, 0 }
   0x7   : > { %s712_s19 = smov (%p30_p0, %s28_s19), 0  ;;  %p50_p4 = scmp.ne.s32.totalorder %s552_s13, %s548_s12 }
   0x8   : > { %p629_p3 = por %p45_p2, %p44_p1  ;;  %s32_s22 = ssub.s32 %s564_s16, %s712_s19 }
   0x9   : > { %p51_p5 = scmp.eq.s32.totalorder %s409_s18, 0  ;;  %p35_p6 = scmp.eq.s32.totalorder %s32_s22, 0 }
   0xa   : > { %p433_p8 = scmp.lt.s32.totalorder %s568_s17, 2  ;;  %s150_s25 = sand.u32 1, %s556_s14  }
   0xb   : > { %p636_p7 = por %p51_p5, %p50_p4  ;;  %s425_s26 = sshll.u32 %s564_s16, 7 }
   0xc   : > { %s642_s24 = scalar_select %p35_p6, %s556_s14, %s37_s20  }
   0xd   : > { %s413_s27 = sshll.u32 %s150_s25, 3  ;;  %s162_s30 = scalar_lea.hbm %s699_s0, %s425_s26 }
   0xe   : > { %s154_s4 = scalar_lea.vmem [#allocation2], %s413_s27  ;;  %p651_p9 = pnand %p433_p8, %p629_p3 }
   0xf   : > { %s164_s5 = sshll.u32 %s154_s4, 4  ;;  %p416_p10 = scmp.ge.s32.totalorder %s568_s17, 1  ;;  %s165_s5 = int_to_ptr.vmem [resolvable:$true] %s164_s5 }
  0x10   : > { %p169_p11 = scmp.lt.s32.totalorder %s568_s17, 3  ;;  %s151_s7 = scalar_lea.sflag [#allocation3], %s150_s25 }
  0x11   : > { %p492_p12 = pneg %p651_p9  ;;  %s503_s8 = scalar_lea.vmem %s165_s5, 128 }
  0x12   : > { %p504_p13 = scmp.ne.s32.totalorder %s165_s5, %s503_s8  ;;  %s570_s9 = smov [#allocation2]  }
  0x13   : > { %s508_s10 = sshll.u32 %s570_s9, 4  ;;  %s509_s10 = int_to_ptr.vmem [resolvable:$false] %s508_s10 }
  0x14   : > { %p506_p0 = pnand %p504_p13, %p492_p12  ;;  %s510_s11 = scalar_lea.vmem %s509_s10, 256 }
  0x15   : > { %p511_p2 = scmp.lt.s32.totalorder %s165_s5, %s509_s10  ;;  %p512_p3 = scmp.lt.s32.totalorder %s510_s11, %s503_s8 }
  0x16   : > { %p507_p1 = pneg %p506_p0 }
  0x17   : > { %p513_p4 = por %p512_p3, %p511_p2 }
  0x19   : > { %p514_p5 = pnand %p513_p4, %p507_p1 }
  0x1b   : > { %517 = shalt.err (!%p514_p5)
}
  0x1c   : > { %432 = dma.hbm_to_vmem [thread:$0]  (!%p651_p9), %s162_s30, 128, %s165_s5, %s151_s7  }
  0x1d   : > { %p170_p6 = pnand %p416_p10, %p169_p11 }
  0x1e   : > { %s175_s12 = sand.u32 (!%p170_p6), 1, %s552_s13  }
  0x1f   : > { %173 = sbr.rel (%p170_p6) target bundleno = 256 (0x100), region = 32  ;;  %s417_s18 = sshll.u32 (!%p170_p6), %s175_s12, 3 }
  0x20   : > { %s176_s20 = scalar_lea.sflag (!%p170_p6), [#allocation3], %s175_s12  ;;  %s179_s21 = scalar_lea.vmem (!%p170_p6), [#allocation2], %s417_s18 }
  0x24   : > { %543 = dma.done.wait (%p636_p7), %s176_s20, 128  }
  0x25   : > { %545 = vsyncadd (%p636_p7), %s176_s20, 4294967168  ;;  %v571_v0 = vmov 0.0   ;;  %v572_v1 = vmov 0   ;;  %v218_v2 = vld [vmem:[%s179_s21] sm:$0xff]  ;;  %vm231_vm0 = vcmask 1043456   ;;  %vm227_vm1 = vcmask 31744  }
  0x26   : > { %300 = vmatprep.mubr.f32.mxu0 %v571_v0  ;;  %484 = vset.pattern.permute.xlu0 %v572_v1  ;;  %v219_v3 = vld [vmem:[%s701_s2] sm:$0x7]  ;;  %v226_v4 = vcombine.high %v218_v2, %v218_v2  ;;  %p208_p7 = scmp.lt.s32.totalorder %s560_s15, 1 }
  0x27   : > { %222 = vperm.xlu0 %484, %v219_v3   ;;  %v217_v5 = vld [vmem:[%s700_s1] sm:$0x7] }
  0x28   : > { %420 = vmatprep.subr.msk.mxu0 %vm231_vm0, %v226_v4  ;;  %s714_s15 = smov (!%p208_p7, %s560_s15), 1 }
  0x29   : > { %421 = vmatpush1.msk.msra.mxu0 %vm231_vm0, %v218_v2  ;;  %s426_s23 = sshll.u32 %s714_s15, 3 }
  0x2a   : > { %422 = vmatmul.mubr.msk.f32.vlgmr.msra.gmra.mxu0 %vm227_vm1, %v217_v5  ;;  %s215_s30 = scalar_lea.vmem %s702_s3, %s426_s23 }
  0xa2   : > { %v223_v6 = vpop.permute.xlu0 %222 }
  0xea   : > { %v302_v7 = vpop.f32.mrf.mxu0 }
  0xeb   : > { %v303_v8 = vadd.f32 %v302_v7, %v223_v6 }
  0xec   : > { %v304_v9 = vpop.f32.mrf.mxu0 }
  0xed   : > { %v305_v10 = vadd.f32 %v304_v9, %v223_v6  ;;  %486 = vtanh.f32 %v303_v8 }
  0xef   : > { %488 = vtanh.f32 %v305_v10 }
  0xfa   : > { %v487_v11 = vpop.eup %486 }
  0xfc   : > { %v489_v12 = vpop.eup %488 }
  0xfd   : > { %v311_v13 = vcombine.low %v487_v11, %v489_v12 }
  0xff   : > { %313 = vst [vmem:[%s215_s30] sm:$0x77] %v311_v13 }
 0x100 PF: > { %s16_s17 = sadd.s32 1, %s568_s17   ;;  %s706_s12 = smov %s552_s13 }
 0x101   : > { %p13_p8 = scmp.ge.s32.totalorder %s16_s17, 4   ;;  %s707_s13 = smov %s556_s14 }
 0x102   : > { %s708_s14 = smov %s642_s24  ;;  %s709_s15 = smov %s564_s16 }
 0x103   : > { %s710_s16 = smov %s712_s19  ;;  %15 = sbr.rel (!%p13_p8) target bundleno = 4 (0x4), region = 72 }
 0x108   :  { %344 = vsyncpa [#allocation3], 1 }
 0x109   :  { %346 = vsyncpa [#allocation3 + $0x1], 1 }

</bundles_post_ra>
